<compile_context>
chip_gen: v7x
topology: tpu7x:2x2x1
jax: 0.10.0
libtpu: 0.0.40
codegen_flags: <defaults>
</compile_context>

<pallas_src>
import functools

import jax
import jax.numpy as jnp
from jax.experimental import pallas as pl
from jax.experimental.pallas import tpu as pltpu

_BN_EPS = 1e-5


# ----------------------------------------------------------------------------
# Fused kernel: conv1+BN+ReLU -> conv2+BN+ReLU -> deconv2x2, one batch element
# ----------------------------------------------------------------------------
def _decoder_kernel(x_ref, w1_ref, s1_ref, b1_ref,
                    w2_ref, s2_ref, b2_ref,
                    wd_ref, bd_ref,
                    o_ref, xpad1_ref, xpad2_ref, *, H, W):
    # x_ref:    (H, W*Cin)            f32   (one batch element, lane-dense)
    # w1_ref:   (3, (W+2)*Cin,  W*Cm) bf16  banded conv1 weight (dx folded in)
    # s1/b1:    (1, W*Cm)             f32   folded BN scale / bias (tiled over W)
    # w2_ref:   (3, (W+2)*Cm,   W*Co) bf16
    # s2/b2:    (1, W*Co)             f32
    # wd_ref:   (2, W*Co, 2*W*Cd)     bf16  deconv weight, one block per dy
    # bd_ref:   (1, 2*W*Cd)           f32
    # o_ref:    (2, H, 2*W*Cd)        f32   o[dy, h, (2w+dx)*Cd+cd]
    # xpad1/2:  VMEM scratch (H+2, (W+2)*C) f32, zero-padded activations
    f32 = jnp.float32
    bf16 = jnp.bfloat16

    def conv3x3(xpad_ref, w_ref, s_ref, b_ref):
        n = w_ref.shape[-1]                       # W * Cout of this layer
        acc = jnp.zeros((H, n), f32)
        for dy in range(3):                       # static unroll, 3 row taps
            acc = acc + jnp.dot(xpad_ref[dy:dy + H, :].astype(bf16),
                                w_ref[dy],
                                preferred_element_type=f32)
        return jnp.maximum(acc * s_ref[...] + b_ref[...], 0.0)

    # ---- conv1 + BN + ReLU ---------------------------------------------------
    cin = x_ref.shape[1] // W
    xpad1_ref[...] = jnp.zeros(xpad1_ref.shape, xpad1_ref.dtype)
    xpad1_ref[1:H + 1, cin:(W + 1) * cin] = x_ref[...]
    h1 = conv3x3(xpad1_ref, w1_ref, s1_ref, b1_ref)          # (H, W*Cm) f32

    # ---- conv2 + BN + ReLU ---------------------------------------------------
    cmid = h1.shape[1] // W
    xpad2_ref[...] = jnp.zeros(xpad2_ref.shape, xpad2_ref.dtype)
    xpad2_ref[1:H + 1, cmid:(W + 1) * cmid] = h1
    h2 = conv3x3(xpad2_ref, w2_ref, s2_ref, b2_ref)          # (H, W*Co) f32

    # ---- ConvTranspose2d k=2 s=2 (no overlap -> 2 matmuls, one per dy) -------
    h2b = h2.astype(bf16)
    o_ref[0, :, :] = (jnp.dot(h2b, wd_ref[0], preferred_element_type=f32)
                      + bd_ref[...]).astype(o_ref.dtype)
    o_ref[1, :, :] = (jnp.dot(h2b, wd_ref[1], preferred_element_type=f32)
                      + bd_ref[...]).astype(o_ref.dtype)


# ----------------------------------------------------------------------------
# Weight preprocessing: banded layouts that fold the width axis into the lanes
# ----------------------------------------------------------------------------
def _conv_band(w_oihw, width):
    """PyTorch Conv2d weight (Cout, Cin, 3, 3) -> (3, (W+2)*Cin, W*Cout)."""
    _, cin, _, _ = w_oihw.shape
    w = jnp.transpose(w_oihw, (2, 3, 1, 0)).astype(jnp.float32)  # (dy,dx,Cin,Cout)
    eye = jnp.eye(width, dtype=jnp.float32)
    # shifts[dx, wi+dx, wi] = 1
    shifts = jnp.stack([jnp.pad(eye, ((dx, 2 - dx), (0, 0))) for dx in range(3)])
    band = jnp.einsum("xpw,yxio->ypiwo", shifts, w)   # (3, W+2, Cin, W, Cout)
    cout = w.shape[-1]
    return band.reshape(3, (width + 2) * cin, width * cout)


def _deconv_band(w_icyx, width):
    """PyTorch ConvTranspose2d weight (Cin, Cd, 2, 2) -> (2, W*Cin, 2W*Cd)."""
    cin, cd, _, _ = w_icyx.shape
    eye = jnp.eye(width, dtype=jnp.float32)
    # sel[dx, w, 2w+dx] = 1
    sel = jnp.stack([jnp.kron(eye, jnp.array([[1.0, 0.0]], jnp.float32)),
                     jnp.kron(eye, jnp.array([[0.0, 1.0]], jnp.float32))])
    band = jnp.einsum("xwq,idyx->ywiqd", sel, w_icyx.astype(jnp.float32))
    return band.reshape(2, width * cin, 2 * width * cd)


def _fold_bn(conv_bias, gamma, beta, running_mean, running_var):
    scale = gamma / jnp.sqrt(running_var + _BN_EPS)
    bias = (conv_bias - running_mean) * scale + beta
    return scale, bias


def make_params(in_ch, mid_ch, out_ch, deconv_ch, H, W, key):
    ks = jax.random.split(key, 8)
    # Conv1 (+ BN1, folded)
    w1 = jax.random.normal(ks[0], (mid_ch, in_ch, 3, 3), jnp.float32) * 0.1
    b1 = jax.random.normal(ks[1], (mid_ch,), jnp.float32) * 0.05
    g1 = 1.0 + 0.1 * jax.random.normal(ks[2], (mid_ch,), jnp.float32)
    s1, bb1 = _fold_bn(b1, g1, 0.05 * jnp.arange(mid_ch, dtype=jnp.float32),
                       0.01 * jnp.arange(mid_ch, dtype=jnp.float32),
                       jnp.ones((mid_ch,), jnp.float32))
    # Conv2 (+ BN2, folded)
    w2 = jax.random.normal(ks[3], (out_ch, mid_ch, 3, 3), jnp.float32) * 0.1
    b2 = jax.random.normal(ks[4], (out_ch,), jnp.float32) * 0.05
    g2 = 1.0 + 0.1 * jax.random.normal(ks[5], (out_ch,), jnp.float32)
    s2, bb2 = _fold_bn(b2, g2, 0.02 * jnp.arange(out_ch, dtype=jnp.float32),
                       -0.05 * jnp.arange(out_ch, dtype=jnp.float32),
                       jnp.ones((out_ch,), jnp.float32))
    # ConvTranspose2d
    wd = jax.random.normal(ks[6], (out_ch, deconv_ch, 2, 2), jnp.float32) * 0.1
    bd = jax.random.normal(ks[7], (deconv_ch,), jnp.float32) * 0.05

    return {
        "w1": _conv_band(w1, W).astype(jnp.bfloat16),
        "s1": jnp.tile(s1, W)[None, :],
        "b1": jnp.tile(bb1, W)[None, :],
        "w2": _conv_band(w2, W).astype(jnp.bfloat16),
        "s2": jnp.tile(s2, W)[None, :],
        "b2": jnp.tile(bb2, W)[None, :],
        "wd": _deconv_band(wd, W).astype(jnp.bfloat16),
        "bd": jnp.tile(bd, 2 * W)[None, :],
    }


# ----------------------------------------------------------------------------
# Forward wrapper
# ----------------------------------------------------------------------------
@jax.jit
def decoder2d_forward(x_nchw, params):
    B, Cin, H, W = x_nchw.shape
    Cmid = params["s1"].shape[1] // W
    Cd = params["bd"].shape[1] // (2 * W)

    # NCHW -> lane-dense (B, H, W*Cin); single small fused XLA transpose.
    x = jnp.transpose(x_nchw, (0, 2, 3, 1)).reshape(B, H, W * Cin)
    x = x.astype(jnp.float32)

    y = pl.pallas_call(
        functools.partial(_decoder_kernel, H=H, W=W),
        out_shape=jax.ShapeDtypeStruct((B, 2, H, 2 * W * Cd), jnp.float32),
        grid=(B,),
        in_specs=[
            pl.BlockSpec((None, H, W * Cin), lambda b: (b, 0, 0)),
            pl.BlockSpec(params["w1"].shape, lambda b: (0, 0, 0)),
            pl.BlockSpec(params["s1"].shape, lambda b: (0, 0)),
            pl.BlockSpec(params["b1"].shape, lambda b: (0, 0)),
            pl.BlockSpec(params["w2"].shape, lambda b: (0, 0, 0)),
            pl.BlockSpec(params["s2"].shape, lambda b: (0, 0)),
            pl.BlockSpec(params["b2"].shape, lambda b: (0, 0)),
            pl.BlockSpec(params["wd"].shape, lambda b: (0, 0, 0)),
            pl.BlockSpec(params["bd"].shape, lambda b: (0, 0)),
        ],
        out_specs=pl.BlockSpec((None, 2, H, 2 * W * Cd), lambda b: (b, 0, 0, 0)),
        scratch_shapes=[
            pltpu.VMEM((H + 2, (W + 2) * Cin), jnp.float32),
            pltpu.VMEM((H + 2, (W + 2) * Cmid), jnp.float32),
        ],
        compiler_params=pltpu.CompilerParams(dimension_semantics=("parallel",)),
    )(x, params["w1"], params["s1"], params["b1"],
      params["w2"], params["s2"], params["b2"],
      params["wd"], params["bd"])

    # y[b, dy, h, (2w+dx)*Cd + cd] -> NCHW (B, Cd, 2H, 2W); one fused transpose.
    y = y.reshape(B, 2, H, 2 * W, Cd)
    out = jnp.transpose(y, (0, 4, 2, 1, 3)).reshape(B, Cd, 2 * H, 2 * W)
    # TODO(synk): Dropout2d branch (dropout=False here) not implemented.
    return out


if __name__ == "__main__":
    key = jax.random.PRNGKey(0)
    kx, kp = jax.random.split(key)
    B, IN_CH, MID_CH, OUT_CH, DEC_CH, H, W = 2, 4, 8, 8, 4, 16, 16
    x = jax.random.normal(kx, (B, IN_CH, H, W), jnp.float32)
    params = make_params(IN_CH, MID_CH, OUT_CH, DEC_CH, H, W, kp)
    out = decoder2d_forward(x, params)
    out = jax.block_until_ready(out)
    assert out.shape == (B, DEC_CH, 2 * H, 2 * W), out.shape
    assert bool(jnp.all(jnp.isfinite(out)))
    print("KERNEL_OK")
</pallas_src>

<mosaic_0001>
module attributes {stable_mosaic.version = 11 : i64} {
  func.func @_decoder_kernel(%arg0: i32, %arg1: memref<1x16x64xf32, #tpu.memory_space<vmem>>, %arg2: memref<3x72x128xbf16, #tpu.memory_space<vmem>>, %arg3: memref<1x128xf32, #tpu.memory_space<vmem>>, %arg4: memref<1x128xf32, #tpu.memory_space<vmem>>, %arg5: memref<3x144x128xbf16, #tpu.memory_space<vmem>>, %arg6: memref<1x128xf32, #tpu.memory_space<vmem>>, %arg7: memref<1x128xf32, #tpu.memory_space<vmem>>, %arg8: memref<2x128x128xbf16, #tpu.memory_space<vmem>>, %arg9: memref<1x128xf32, #tpu.memory_space<vmem>>, %arg10: memref<1x2x16x128xf32, #tpu.memory_space<vmem>>, %arg11: memref<18x72xf32, #tpu.memory_space<vmem>>, %arg12: memref<18x144xf32, #tpu.memory_space<vmem>>) attributes {dimension_semantics = [#tpu.dimension_semantics<parallel>], iteration_bounds = array<i64: 2>, scalar_prefetch = 0 : i64, scratch_operands = 2 : i64, tpu.core_type = #tpu.core_type<tc>, window_params = [{transform_indices = @transform_0, window_bounds = array<i64: 1, 16, 64>}, {pipeline_mode = #tpu.pipeline_mode<synchronous>, transform_indices = @transform_1, window_bounds = array<i64: 3, 72, 128>}, {pipeline_mode = #tpu.pipeline_mode<synchronous>, transform_indices = @transform_2, window_bounds = array<i64: 1, 128>}, {pipeline_mode = #tpu.pipeline_mode<synchronous>, transform_indices = @transform_3, window_bounds = array<i64: 1, 128>}, {pipeline_mode = #tpu.pipeline_mode<synchronous>, transform_indices = @transform_4, window_bounds = array<i64: 3, 144, 128>}, {pipeline_mode = #tpu.pipeline_mode<synchronous>, transform_indices = @transform_5, window_bounds = array<i64: 1, 128>}, {pipeline_mode = #tpu.pipeline_mode<synchronous>, transform_indices = @transform_6, window_bounds = array<i64: 1, 128>}, {pipeline_mode = #tpu.pipeline_mode<synchronous>, transform_indices = @transform_7, window_bounds = array<i64: 2, 128, 128>}, {pipeline_mode = #tpu.pipeline_mode<synchronous>, transform_indices = @transform_8, window_bounds = array<i64: 1, 128>}, {transform_indices = @transform_9, window_bounds = array<i64: 1, 2, 16, 128>}]} {
    %cst = arith.constant 0.000000e+00 : f32
    %0 = vector.broadcast %cst : f32 to vector<18x72xf32>
    %c0 = arith.constant 0 : index
    %c0_0 = arith.constant 0 : index
    %1 = vector.load %arg11[%c0, %c0_0] : memref<18x72xf32, #tpu.memory_space<vmem>>, vector<18x72xf32>
    tpu.vector_store %arg11[%c0, %c0_0], %0 {strides = array<i32>} : memref<18x72xf32, #tpu.memory_space<vmem>>, vector<18x72xf32>,
    %c0_1 = arith.constant 0 : index
    %c0_2 = arith.constant 0 : index
    %c0_3 = arith.constant 0 : index
    %2 = vector.load %arg1[%c0_1, %c0_2, %c0_3] : memref<1x16x64xf32, #tpu.memory_space<vmem>>, vector<1x16x64xf32>
    %3 = vector.shape_cast %2 : vector<1x16x64xf32> to vector<16x64xf32>
    %c1 = arith.constant 1 : index
    %c4 = arith.constant 4 : index
    %4 = vector.load %arg11[%c1, %c4] : memref<18x72xf32, #tpu.memory_space<vmem>>, vector<16x64xf32>
    tpu.vector_store %arg11[%c1, %c4], %3 {strides = array<i32>} : memref<18x72xf32, #tpu.memory_space<vmem>>, vector<16x64xf32>,
    %cst_4 = arith.constant 0.000000e+00 : f32
    %5 = vector.broadcast %cst_4 : f32 to vector<16x128xf32>
    %c0_5 = arith.constant 0 : index
    %c0_6 = arith.constant 0 : index
    %6 = vector.load %arg11[%c0_5, %c0_6] : memref<18x72xf32, #tpu.memory_space<vmem>>, vector<16x72xf32>
    %7 = arith.truncf %6 : vector<16x72xf32> to vector<16x72xbf16>
    %c0_7 = arith.constant 0 : index
    %c0_8 = arith.constant 0 : index
    %c0_9 = arith.constant 0 : index
    %8 = vector.load %arg2[%c0_7, %c0_8, %c0_9] : memref<3x72x128xbf16, #tpu.memory_space<vmem>>, vector<1x72x128xbf16>
    %9 = vector.shape_cast %8 : vector<1x72x128xbf16> to vector<72x128xbf16>
    %cst_10 = arith.constant dense<0.000000e+00> : vector<16x128xf32>
    %10 = tpu.matmul %7, %9, %cst_10 {dimension_numbers = #tpu.dot_dimension_numbers<[1], [0], [0], [1], [0, 0, 1, 1], [], []>} : vector<16x72xbf16>, vector<72x128xbf16>, vector<16x128xf32> -> vector<16x128xf32>
    %11 = arith.addf %5, %10 : vector<16x128xf32>
    %c1_11 = arith.constant 1 : index
    %c0_12 = arith.constant 0 : index
    %12 = vector.load %arg11[%c1_11, %c0_12] : memref<18x72xf32, #tpu.memory_space<vmem>>, vector<16x72xf32>
    %13 = arith.truncf %12 : vector<16x72xf32> to vector<16x72xbf16>
    %c1_13 = arith.constant 1 : index
    %c0_14 = arith.constant 0 : index
    %c0_15 = arith.constant 0 : index
    %14 = vector.load %arg2[%c1_13, %c0_14, %c0_15] : memref<3x72x128xbf16, #tpu.memory_space<vmem>>, vector<1x72x128xbf16>
    %15 = vector.shape_cast %14 : vector<1x72x128xbf16> to vector<72x128xbf16>
    %cst_16 = arith.constant dense<0.000000e+00> : vector<16x128xf32>
    %16 = tpu.matmul %13, %15, %cst_16 {dimension_numbers = #tpu.dot_dimension_numbers<[1], [0], [0], [1], [0, 0, 1, 1], [], []>} : vector<16x72xbf16>, vector<72x128xbf16>, vector<16x128xf32> -> vector<16x128xf32>
    %17 = arith.addf %11, %16 : vector<16x128xf32>
    %c2 = arith.constant 2 : index
    %c0_17 = arith.constant 0 : index
    %18 = vector.load %arg11[%c2, %c0_17] : memref<18x72xf32, #tpu.memory_space<vmem>>, vector<16x72xf32>
    %19 = arith.truncf %18 : vector<16x72xf32> to vector<16x72xbf16>
    %c2_18 = arith.constant 2 : index
    %c0_19 = arith.constant 0 : index
    %c0_20 = arith.constant 0 : index
    %20 = vector.load %arg2[%c2_18, %c0_19, %c0_20] : memref<3x72x128xbf16, #tpu.memory_space<vmem>>, vector<1x72x128xbf16>
    %21 = vector.shape_cast %20 : vector<1x72x128xbf16> to vector<72x128xbf16>
    %cst_21 = arith.constant dense<0.000000e+00> : vector<16x128xf32>
    %22 = tpu.matmul %19, %21, %cst_21 {dimension_numbers = #tpu.dot_dimension_numbers<[1], [0], [0], [1], [0, 0, 1, 1], [], []>} : vector<16x72xbf16>, vector<72x128xbf16>, vector<16x128xf32> -> vector<16x128xf32>
    %23 = arith.addf %17, %22 : vector<16x128xf32>
    %c0_22 = arith.constant 0 : index
    %c0_23 = arith.constant 0 : index
    %24 = vector.load %arg3[%c0_22, %c0_23] : memref<1x128xf32, #tpu.memory_space<vmem>>, vector<1x128xf32>
    %25 = vector.broadcast %24 : vector<1x128xf32> to vector<16x128xf32>
    %26 = arith.mulf %23, %25 : vector<16x128xf32>
    %c0_24 = arith.constant 0 : index
    %c0_25 = arith.constant 0 : index
    %27 = vector.load %arg4[%c0_24, %c0_25] : memref<1x128xf32, #tpu.memory_space<vmem>>, vector<1x128xf32>
    %28 = vector.broadcast %27 : vector<1x128xf32> to vector<16x128xf32>
    %29 = arith.addf %26, %28 : vector<16x128xf32>
    %cst_26 = arith.constant 0.000000e+00 : f32
    %30 = vector.broadcast %cst_26 : f32 to vector<16x128xf32>
    %31 = arith.maximumf %29, %30 : vector<16x128xf32>
    %cst_27 = arith.constant 0.000000e+00 : f32
    %32 = vector.broadcast %cst_27 : f32 to vector<18x144xf32>
    %c0_28 = arith.constant 0 : index
    %c0_29 = arith.constant 0 : index
    %33 = vector.load %arg12[%c0_28, %c0_29] : memref<18x144xf32, #tpu.memory_space<vmem>>, vector<18x144xf32>
    tpu.vector_store %arg12[%c0_28, %c0_29], %32 {strides = array<i32>} : memref<18x144xf32, #tpu.memory_space<vmem>>, vector<18x144xf32>,
    %c1_30 = arith.constant 1 : index
    %c8 = arith.constant 8 : index
    %34 = vector.load %arg12[%c1_30, %c8] : memref<18x144xf32, #tpu.memory_space<vmem>>, vector<16x128xf32>
    tpu.vector_store %arg12[%c1_30, %c8], %31 {strides = array<i32>} : memref<18x144xf32, #tpu.memory_space<vmem>>, vector<16x128xf32>,
    %cst_31 = arith.constant 0.000000e+00 : f32
    %35 = vector.broadcast %cst_31 : f32 to vector<16x128xf32>
    %c0_32 = arith.constant 0 : index
    %c0_33 = arith.constant 0 : index
    %36 = vector.load %arg12[%c0_32, %c0_33] : memref<18x144xf32, #tpu.memory_space<vmem>>, vector<16x144xf32>
    %37 = arith.truncf %36 : vector<16x144xf32> to vector<16x144xbf16>
    %c0_34 = arith.constant 0 : index
    %c0_35 = arith.constant 0 : index
    %c0_36 = arith.constant 0 : index
    %38 = vector.load %arg5[%c0_34, %c0_35, %c0_36] : memref<3x144x128xbf16, #tpu.memory_space<vmem>>, vector<1x144x128xbf16>
    %39 = vector.shape_cast %38 : vector<1x144x128xbf16> to vector<144x128xbf16>
    %cst_37 = arith.constant dense<0.000000e+00> : vector<16x128xf32>
    %40 = tpu.matmul %37, %39, %cst_37 {dimension_numbers = #tpu.dot_dimension_numbers<[1], [0], [0], [1], [0, 0, 1, 1], [], []>} : vector<16x144xbf16>, vector<144x128xbf16>, vector<16x128xf32> -> vector<16x128xf32>
    %41 = arith.addf %35, %40 : vector<16x128xf32>
    %c1_38 = arith.constant 1 : index
    %c0_39 = arith.constant 0 : index
    %42 = vector.load %arg12[%c1_38, %c0_39] : memref<18x144xf32, #tpu.memory_space<vmem>>, vector<16x144xf32>
    %43 = arith.truncf %42 : vector<16x144xf32> to vector<16x144xbf16>
    %c1_40 = arith.constant 1 : index
    %c0_41 = arith.constant 0 : index
    %c0_42 = arith.constant 0 : index
    %44 = vector.load %arg5[%c1_40, %c0_41, %c0_42] : memref<3x144x128xbf16, #tpu.memory_space<vmem>>, vector<1x144x128xbf16>
    %45 = vector.shape_cast %44 : vector<1x144x128xbf16> to vector<144x128xbf16>
    %cst_43 = arith.constant dense<0.000000e+00> : vector<16x128xf32>
    %46 = tpu.matmul %43, %45, %cst_43 {dimension_numbers = #tpu.dot_dimension_numbers<[1], [0], [0], [1], [0, 0, 1, 1], [], []>} : vector<16x144xbf16>, vector<144x128xbf16>, vector<16x128xf32> -> vector<16x128xf32>
    %47 = arith.addf %41, %46 : vector<16x128xf32>
    %c2_44 = arith.constant 2 : index
    %c0_45 = arith.constant 0 : index
    %48 = vector.load %arg12[%c2_44, %c0_45] : memref<18x144xf32, #tpu.memory_space<vmem>>, vector<16x144xf32>
    %49 = arith.truncf %48 : vector<16x144xf32> to vector<16x144xbf16>
    %c2_46 = arith.constant 2 : index
    %c0_47 = arith.constant 0 : index
    %c0_48 = arith.constant 0 : index
    %50 = vector.load %arg5[%c2_46, %c0_47, %c0_48] : memref<3x144x128xbf16, #tpu.memory_space<vmem>>, vector<1x144x128xbf16>
    %51 = vector.shape_cast %50 : vector<1x144x128xbf16> to vector<144x128xbf16>
    %cst_49 = arith.constant dense<0.000000e+00> : vector<16x128xf32>
    %52 = tpu.matmul %49, %51, %cst_49 {dimension_numbers = #tpu.dot_dimension_numbers<[1], [0], [0], [1], [0, 0, 1, 1], [], []>} : vector<16x144xbf16>, vector<144x128xbf16>, vector<16x128xf32> -> vector<16x128xf32>
    %53 = arith.addf %47, %52 : vector<16x128xf32>
    %c0_50 = arith.constant 0 : index
    %c0_51 = arith.constant 0 : index
    %54 = vector.load %arg6[%c0_50, %c0_51] : memref<1x128xf32, #tpu.memory_space<vmem>>, vector<1x128xf32>
    %55 = vector.broadcast %54 : vector<1x128xf32> to vector<16x128xf32>
    %56 = arith.mulf %53, %55 : vector<16x128xf32>
    %c0_52 = arith.constant 0 : index
    %c0_53 = arith.constant 0 : index
    %57 = vector.load %arg7[%c0_52, %c0_53] : memref<1x128xf32, #tpu.memory_space<vmem>>, vector<1x128xf32>
    %58 = vector.broadcast %57 : vector<1x128xf32> to vector<16x128xf32>
    %59 = arith.addf %56, %58 : vector<16x128xf32>
    %cst_54 = arith.constant 0.000000e+00 : f32
    %60 = vector.broadcast %cst_54 : f32 to vector<16x128xf32>
    %61 = arith.maximumf %59, %60 : vector<16x128xf32>
    %62 = arith.truncf %61 : vector<16x128xf32> to vector<16x128xbf16>
    %c0_55 = arith.constant 0 : index
    %c0_56 = arith.constant 0 : index
    %c0_57 = arith.constant 0 : index
    %63 = vector.load %arg8[%c0_55, %c0_56, %c0_57] : memref<2x128x128xbf16, #tpu.memory_space<vmem>>, vector<1x128x128xbf16>
    %64 = vector.shape_cast %63 : vector<1x128x128xbf16> to vector<128x128xbf16>
    %cst_58 = arith.constant dense<0.000000e+00> : vector<16x128xf32>
    %65 = tpu.matmul %62, %64, %cst_58 {dimension_numbers = #tpu.dot_dimension_numbers<[1], [0], [0], [1], [0, 0, 1, 1], [], []>} : vector<16x128xbf16>, vector<128x128xbf16>, vector<16x128xf32> -> vector<16x128xf32>
    %c0_59 = arith.constant 0 : index
    %c0_60 = arith.constant 0 : index
    %66 = vector.load %arg9[%c0_59, %c0_60] : memref<1x128xf32, #tpu.memory_space<vmem>>, vector<1x128xf32>
    %67 = vector.broadcast %66 : vector<1x128xf32> to vector<16x128xf32>
    %68 = arith.addf %65, %67 : vector<16x128xf32>
    %c0_61 = arith.constant 0 : index
    %c0_62 = arith.constant 0 : index
    %c0_63 = arith.constant 0 : index
    %c0_64 = arith.constant 0 : index
    %69 = vector.load %arg10[%c0_61, %c0_62, %c0_63, %c0_64] : memref<1x2x16x128xf32, #tpu.memory_space<vmem>>, vector<1x1x16x128xf32>
    %70 = vector.shape_cast %69 : vector<1x1x16x128xf32> to vector<16x128xf32>
    %71 = vector.shape_cast %68 : vector<16x128xf32> to vector<1x1x16x128xf32>
    tpu.vector_store %arg10[%c0_61, %c0_62, %c0_63, %c0_64], %71 {strides = array<i32>} : memref<1x2x16x128xf32, #tpu.memory_space<vmem>>, vector<1x1x16x128xf32>,
    %c1_65 = arith.constant 1 : index
    %c0_66 = arith.constant 0 : index
    %c0_67 = arith.constant 0 : index
    %72 = vector.load %arg8[%c1_65, %c0_66, %c0_67] : memref<2x128x128xbf16, #tpu.memory_space<vmem>>, vector<1x128x128xbf16>
    %73 = vector.shape_cast %72 : vector<1x128x128xbf16> to vector<128x128xbf16>
    %cst_68 = arith.constant dense<0.000000e+00> : vector<16x128xf32>
    %74 = tpu.matmul %62, %73, %cst_68 {dimension_numbers = #tpu.dot_dimension_numbers<[1], [0], [0], [1], [0, 0, 1, 1], [], []>} : vector<16x128xbf16>, vector<128x128xbf16>, vector<16x128xf32> -> vector<16x128xf32>
    %c0_69 = arith.constant 0 : index
    %c0_70 = arith.constant 0 : index
    %75 = vector.load %arg9[%c0_69, %c0_70] : memref<1x128xf32, #tpu.memory_space<vmem>>, vector<1x128xf32>
    %76 = vector.broadcast %75 : vector<1x128xf32> to vector<16x128xf32>
    %77 = arith.addf %74, %76 : vector<16x128xf32>
    %c0_71 = arith.constant 0 : index
    %c1_72 = arith.constant 1 : index
    %c0_73 = arith.constant 0 : index
    %c0_74 = arith.constant 0 : index
    %78 = vector.load %arg10[%c0_71, %c1_72, %c0_73, %c0_74] : memref<1x2x16x128xf32, #tpu.memory_space<vmem>>, vector<1x1x16x128xf32>
    %79 = vector.shape_cast %78 : vector<1x1x16x128xf32> to vector<16x128xf32>
    %80 = vector.shape_cast %77 : vector<16x128xf32> to vector<1x1x16x128xf32>
    tpu.vector_store %arg10[%c0_71, %c1_72, %c0_73, %c0_74], %80 {strides = array<i32>} : memref<1x2x16x128xf32, #tpu.memory_space<vmem>>, vector<1x1x16x128xf32>,
    return
  }
  func.func @transform_0(%arg0: i32) -> (i32, i32, i32) {
    %c0_i32 = arith.constant 0 : i32
    %c0_i32_0 = arith.constant 0 : i32
    %c0_i32_1 = arith.constant 0 : i32
    return %arg0, %c0_i32, %c0_i32_0 : i32, i32, i32
  }
  func.func @transform_1(%arg0: i32) -> (i32, i32, i32) {
    %c0_i32 = arith.constant 0 : i32
    %c0_i32_0 = arith.constant 0 : i32
    %c0_i32_1 = arith.constant 0 : i32
    %c0_i32_2 = arith.constant 0 : i32
    return %c0_i32, %c0_i32_0, %c0_i32_1 : i32, i32, i32
  }
  func.func @transform_2(%arg0: i32) -> (i32, i32) {
    %c0_i32 = arith.constant 0 : i32
    %c0_i32_0 = arith.constant 0 : i32
    %c0_i32_1 = arith.constant 0 : i32
    return %c0_i32, %c0_i32_0 : i32, i32
  }
  func.func @transform_3(%arg0: i32) -> (i32, i32) {
    %c0_i32 = arith.constant 0 : i32
    %c0_i32_0 = arith.constant 0 : i32
    %c0_i32_1 = arith.constant 0 : i32
    return %c0_i32, %c0_i32_0 : i32, i32
  }
  func.func @transform_4(%arg0: i32) -> (i32, i32, i32) {
    %c0_i32 = arith.constant 0 : i32
    %c0_i32_0 = arith.constant 0 : i32
    %c0_i32_1 = arith.constant 0 : i32
    %c0_i32_2 = arith.constant 0 : i32
    return %c0_i32, %c0_i32_0, %c0_i32_1 : i32, i32, i32
  }
  func.func @transform_5(%arg0: i32) -> (i32, i32) {
    %c0_i32 = arith.constant 0 : i32
    %c0_i32_0 = arith.constant 0 : i32
    %c0_i32_1 = arith.constant 0 : i32
    return %c0_i32, %c0_i32_0 : i32, i32
  }
  func.func @transform_6(%arg0: i32) -> (i32, i32) {
    %c0_i32 = arith.constant 0 : i32
    %c0_i32_0 = arith.constant 0 : i32
    %c0_i32_1 = arith.constant 0 : i32
    return %c0_i32, %c0_i32_0 : i32, i32
  }
  func.func @transform_7(%arg0: i32) -> (i32, i32, i32) {
    %c0_i32 = arith.constant 0 : i32
    %c0_i32_0 = arith.constant 0 : i32
    %c0_i32_1 = arith.constant 0 : i32
    %c0_i32_2 = arith.constant 0 : i32
    return %c0_i32, %c0_i32_0, %c0_i32_1 : i32, i32, i32
  }
  func.func @transform_8(%arg0: i32) -> (i32, i32) {
    %c0_i32 = arith.constant 0 : i32
    %c0_i32_0 = arith.constant 0 : i32
    %c0_i32_1 = arith.constant 0 : i32
    return %c0_i32, %c0_i32_0 : i32, i32
  }
  func.func @transform_9(%arg0: i32) -> (i32, i32, i32, i32) {
    %c0_i32 = arith.constant 0 : i32
    %c0_i32_0 = arith.constant 0 : i32
    %c0_i32_1 = arith.constant 0 : i32
    %c0_i32_2 = arith.constant 0 : i32
    return %arg0, %c0_i32, %c0_i32_0, %c0_i32_1 : i32, i32, i32, i32
  }
}

</mosaic_0001>

<bundles_post_ra>
// kernel: decoder2d_forward.1
= control target key start
LH: loop header
LB: loop body
LE: loop exit
PB: predicated region body
PF: predicated region fallthrough
CT: control target
= control target key end

     0   :  { %14 = vsyncpa [#allocation5], 0  ;;  %s1870_s30 = smov 0   ;;  %s2171_s0 = inlined_call_operand.vmem [shape: f32[2,16,64], index: 0, kind: input, shape index: {}]   ;;  %s2172_s1 = inlined_call_operand.hbm [shape: bf16[3,72,128], index: 1, kind: input, shape index: {}]   ;;  %s2173_s2 = inlined_call_operand.vmem [shape: f32[1,128], index: 2, kind: input, shape index: {}]   ;;  %s2174_s3 = inlined_call_operand.vmem [shape: f32[1,128], index: 3, kind: input, shape index: {}]   ;;  %s2175_s4 = inlined_call_operand.vmem [shape: bf16[3,144,128], index: 4, kind: input, shape index: {}]   ;;  %s2176_s5 = inlined_call_operand.vmem [shape: f32[1,128], index: 5, kind: input, shape index: {}]   ;;  %s2177_s6 = inlined_call_operand.vmem [shape: f32[1,128], index: 6, kind: input, shape index: {}]   ;;  %s2178_s7 = inlined_call_operand.vmem [shape: bf16[2,128,128], index: 7, kind: input, shape index: {}]   ;;  %s2179_s8 = inlined_call_operand.vmem [shape: f32[1,128], index: 8, kind: input, shape index: {}]   ;;  %s2180_s9 = inlined_call_operand.vmem [shape: f32[2,2,16,128], index: 9, kind: output, shape index: {}]  }
   0x1 LB: > { %s1876_s10 = sadd.s32 4294967295, %s1810_s30   ;;  %p1417_p0 = scmp.ge.s32.totalorder %s1810_s30, 1  ;;  %s1810_s30 = sphi %s1870_s30, %s20_s30  }
   0x2   : > { %p245_p1 = scmp.lt.s32.totalorder %s1810_s30, 3  ;;  %s1812_s11 = smov [#allocation4]  }
   0x3   : > { %s257_s12 = sshll.u32 %s1812_s11, 4  ;;  %p2181_p3 = scmp.eq.s32.totalorder %s1876_s10, 0  ;;  %s258_s12 = int_to_ptr.vmem [resolvable:$true] %s257_s12 }
   0x4   : > { %p1880_p2 = pnand %p1417_p0, %p245_p1  ;;  %s1772_s17 = scalar_lea.hbm %s2172_s1, 1728 }
   0x5   : > { %p1773_p6 = scmp.ne.s32.totalorder %s2172_s1, %s1772_s17  ;;  %p1779_p10 = scmp.lt.u32.totalorder %s1772_s17, %s2172_s1 }
   0x6   : > { %s2183_s13 = scalar_select %p1880_p2, 1, 0 }
   0x7   : > { %p1692_p4 = pneg %p1880_p2 }
   0x9   : > { %p1889_p5 = pnand %p2181_p3, %p1692_p4 }
   0xb   : > { %p1774_p7 = pneg %p1889_p5 }
   0xd   : > { %p1775_p8 = pnand %p1774_p7, %p1773_p6 }
   0xf   : > { %p1776_p9 = pneg %p1775_p8 }
  0x11   : > { %p1781_p11 = pnand %p1779_p10, %p1776_p9 }
  0x13   : > { %1784 = shalt.err (!%p1781_p11)
}
  0x14   : > { %s1785_s22 = scalar_lea.vmem %s258_s12, 1728  ;;  %p1793_p1 = scmp.lt.s32.totalorder %s258_s12, %s258_s12 }
  0x15   : > { %p1786_p12 = scmp.ne.s32.totalorder %s258_s12, %s1785_s22  ;;  %p1794_p4 = scmp.lt.s32.totalorder %s1785_s22, %s1785_s22 }
  0x17   : > { %p1788_p13 = pnand %p1786_p12, %p1774_p7  ;;  %p1795_p3 = por %p1794_p4, %p1793_p1 }
  0x19   : > { %p1789_p0 = pneg %p1788_p13 }
  0x1b   : > { %p1796_p2 = pnand %p1795_p3, %p1789_p0 }
  0x1d   : > { %1799 = shalt.err (!%p1796_p2)
}
  0x1e   : > { %s1813_s23 = smov 64   ;;  %s1814_s24 = smov 4  }
  0x1f   : > { %1695 = dma.hbm_to_vmem [thread:$0]  (!%p1889_p5), %s2172_s1, 1728, %s258_s12, [#allocation5], %s1813_s23, %s1813_s23, %s1814_s24  }
  0x20   : > { %p2185_p6 = scmp.ne.s32.totalorder %s2183_s13, 0 }
  0x21   : > { %p2186_p8 = scmp.eq.s32.totalorder (!%p2185_p6), %s1876_s10, 0 }
  0x22   : > { %302 = sbr.rel (%p2185_p6) target bundleno = 1118 (0x45e), region = 56 }
  0x29   : > { %1805 = dma.done.wait (%p2186_p8), [#allocation5], 1728   ;;  %p2187_p7 = pmov %p2186_p8 }
  0x2a   : > { %p338_p2 = scmp.lt.s32.totalorder %s1876_s10, 1  ;;  %vm349_vm0 = vcmask 588800   ;;  %v1815_v0 = vmov 0.0   ;;  %vm352_vm1 = vcmask 582656   ;;  %vm1816_vm2 = vmmov 0   ;;  %s1817_s12 = smov 4  }
  0x2b   : > { %1807 = vsyncadd (%p2187_p7), [#allocation5], 4294965568  ;;  %1590 = vmatprep.subr.bf16.mxu0 %v1815_v0  ;;  %650 = vst [vmem:[#allocation3] sm:$0xff] %v1815_v0  ;;  %1600 = vmatprep.mubr.msk.bf16.mxu0 %vm1816_vm2, %v1815_v0  ;;  %v1714_v2 = vld [vmem:[#allocation4 + $0x24] sm:$0xff]   ;;  %v1715_v4 = vld [vmem:[#allocation4 + $0x2c] sm:$0xff]   ;;  %vm422_vm3 = vcmask 1043456  }
  0x2c   : > { %653 = vst [vmem:[#allocation3 + $0x10] sm:$0xff] %v1815_v0  ;;  %655 = vst [vmem:[#allocation3 + $0x20] sm:$0x3] %v1815_v0  ;;  %s2189_s10 = smov (!%p338_p2, %s1876_s10), 1  ;;  %1591 = vmatpush3.bf16.msra.mxu0 %v1714_v2  ;;  %v1716_v5 = vld [vmem:[#allocation4 + $0x34] sm:$0xff]   ;;  %v1717_v6 = vld [vmem:[#allocation4 + $0x3c] sm:$0xff]  }
  0x2d   : > { %350 = vst.msk [vmem:[#allocation2] sm:$0xff] %vm349_vm0, %v1815_v0  ;;  %351 = vst.msk [vmem:[#allocation2 + $0x8] sm:$0xff] %vm349_vm0, %v1815_v0  ;;  %s1552_s27 = sshll.u32 %s2189_s10, 4  ;;  %1592 = vmatprep.subr.bf16.mxu0 %v1815_v0  ;;  %v1718_v7 = vld [vmem:[#allocation4 + $0x44] ss:$0 sps:$4 sm:$0xff]   ;;  %vm364_vm4 = vcmask 556064  }
  0x2e   : > { %353 = vst.msk [vmem:[#allocation2 + $0x10] sm:$0x3] %vm352_vm1, %v1815_v0  ;;  %s342_s11 = scalar_lea.vmem %s2171_s0, %s1552_s27  ;;  %v424_v8 = vsel %vm422_vm3, %v1718_v7, 0  ;;  %v1719_v13 = vld [vmem:[#allocation4] sm:$0xff]   ;;  %v1720_v15 = vld [vmem:[#allocation4 + $0x8] sm:$0xff]   ;;  %v1721_v16 = vld [vmem:[#allocation4 + $0x10] sm:$0xff]  }
  0x2f   : > { %v354_v1 = vld [vmem:[%s342_s11] sm:$0xff]  ;;  %v355_v3 = vld [vmem:[%s342_s11 + $0x8] sm:$0xff]  ;;  %v1724_v22 = vld [vmem:[#allocation4 + $0x48] sm:$0xff]   ;;  %vm651_vm5 = vcmask 130048   ;;  %v1818_v33 = vmov 0   ;;  %vm656_vm6 = vcmask 123904  }
  0x30   : > { %358 = vrot.lane.b32.xlu0 %v354_v1, %s1817_s12  ;;  %1593 = vmatpush3.bf16.msra.mxu0 %v1715_v4  ;;  %v1722_v17 = vld [vmem:[#allocation4 + $0x18] sm:$0xff]   ;;  %v1723_v18 = vld [vmem:[#allocation4 + $0x20] ss:$0 sps:$4 sm:$0xff]   ;;  %v1725_v24 = vld [vmem:[#allocation4 + $0x50] sm:$0xff]   ;;  %652 = vst.msk [vmem:[#allocation3 + $0x8] sm:$0xff] %vm651_vm5, %v1815_v0  ;;  %vm660_vm7 = vcmask 1040384  }
  0x31   : > { %1594 = vmatprep.subr.bf16.mxu0 %v1815_v0  ;;  %v498_v19 = vsel %vm422_vm3, %v1723_v18, 0  ;;  %v1726_v25 = vld [vmem:[#allocation4 + $0x58] sm:$0xff]   ;;  %v1727_v26 = vld [vmem:[#allocation4 + $0x60] sm:$0xff]   ;;  %v1728_v27 = vld [vmem:[#allocation4 + $0x68] ss:$0 sps:$4 sm:$0xff]   ;;  %819 = vmatprep.subr.bf16.mxu1 %v1818_v33  ;;  %654 = vst.msk [vmem:[#allocation3 + $0x18] sm:$0xff] %vm651_vm5, %v1815_v0 }
  0x32   : > { %v585_v28 = vsel %vm422_vm3, %v1728_v27, 0  ;;  %v1729_v32 = vld [vmem:[%s2175_s4 + $0x48] sm:$0xff]   ;;  %v1730_v34 = vld [vmem:[%s2175_s4 + $0x50] sm:$0xff]   ;;  %v1731_v35 = vld [vmem:[%s2175_s4 + $0x58] sm:$0xff]   ;;  %657 = vst.msk [vmem:[#allocation3 + $0x28] sm:$0x3] %vm656_vm6, %v1815_v0 }
  0x33   : > { %820 = vmatpush1.bf16.msra.mxu1 %v1729_v32  ;;  %v1732_v36 = vld [vmem:[%s2175_s4 + $0x60] sm:$0xff]   ;;  %v1733_v37 = vld [vmem:[%s2175_s4 + $0x68] sm:$0xff]   ;;  %v1734_v41 = vld [vmem:[%s2175_s4 + $0x70] sm:$0xff]   ;;  %s1819_s14 = smov 8   ;;  %vm673_vm8 = vcmask 1047617   ;;  %vm675_vm9 = vcmask 64513  }
  0x34   : > { %360 = vrot.lane.b32.xlu0 %v355_v3, %s1817_s12  ;;  %1595 = vmatpush3.bf16.msra.mxu0 %v1716_v5  ;;  %v1444_v38 = vld [vmem:[%s2173_s2] ss:$0 sm:$0xff]  ;;  %v1735_v45 = vld [vmem:[%s2175_s4 + $0x78] sm:$0xff]   ;;  %v1737_v55 = vld [vmem:[%s2175_s4 + $0x88] sm:$0xff]   ;;  %vm681_vm10 = vcmask 1040448   ;;  %vm683_vm11 = vcmask 57344  }
  0x35   : > { %1596 = vmatprep.subr.bf16.mxu0 %v1815_v0  ;;  %821 = vmatprep.subr.bf16.mxu1 %v1818_v33  ;;  %v1445_v40 = vld [vmem:[%s2174_s3] ss:$0 sm:$0xff]  ;;  %v1757_v58 = vld [vmem:[%s2178_s7 + $0x8] sm:$0xff]   ;;  %v1758_v59 = vld [vmem:[%s2178_s7 + $0x10] sm:$0xff]   ;;  %vm677_vm12 = vcmask 1047616   ;;  %vm679_vm13 = vcmask 64512  }
  0x36   : > { %v1736_v51 = vld [vmem:[%s2175_s4 + $0x80] sm:$0xff]   ;;  %v1759_v60 = vld [vmem:[%s2178_s7 + $0x18] sm:$0xff]   ;;  %v1761_v62 = vld [vmem:[%s2178_s7 + $0x28] sm:$0xff]   ;;  %vm736_vm14 = vsmask.f32 7424  ;;  %vm989_vm15 = vcmask 1046528  }
  0x37   : > { %822 = vmatpush1.bf16.msra.mxu1 %v1730_v34  ;;  %v1756_v57 = vld [vmem:[%s2178_s7] sm:$0xff]   ;;  %v1741_v32 = vld [vmem:[%s2175_s4 + $0x18] sm:$0xff]   ;;  %s1553_s13 = sshll.u32 %s2189_s10, 5 }
  0x38   : > { %1597 = vmatpush3.bf16.msra.mxu0 %v1717_v6  ;;  %823 = vmatprep.subr.bf16.mxu1 %v1818_v33  ;;  %v1760_v61 = vld [vmem:[%s2178_s7 + $0x20] sm:$0xff]   ;;  %s347_s18 = scalar_lea.vmem %s2180_s9, %s1553_s13 }
  0x39   : > { %1598 = vmatprep.subr.bf16.mxu0 %v1815_v0  ;;  %v1742_v34 = vld [vmem:[%s2175_s4 + $0x20] sm:$0xff]  }
  0x3b   : > { %824 = vmatpush1.bf16.msra.mxu1 %v1731_v35  ;;  %v1743_v35 = vld [vmem:[%s2175_s4 + $0x28] sm:$0xff]  }
  0x3c   : > { %1599 = vmatpush3.bf16.msra.mxu0 %v424_v8  ;;  %825 = vmatprep.subr.bf16.mxu1 %v1818_v33 }
  0x3d   : > { %1604 = vmatprep.subr.bf16.mxu0 %v1815_v0 }
  0x3f   : > { %826 = vmatpush1.bf16.msra.mxu1 %v1732_v36  ;;  %v1744_v36 = vld [vmem:[%s2175_s4 + $0x30] sm:$0xff]  }
  0x40   : > { %827 = vmatprep.subr.bf16.mxu1 %v1818_v33 }
  0x43   : > { %828 = vmatpush1.bf16.msra.mxu1 %v1733_v37  ;;  %v1745_v37 = vld [vmem:[%s2175_s4 + $0x38] sm:$0xff]  }
  0x44   : > { %829 = vmatprep.subr.bf16.mxu1 %v1818_v33 }
  0x47   : > { %830 = vmatpush1.bf16.msra.mxu1 %v1734_v41  ;;  %v1746_v41 = vld [vmem:[%s2175_s4 + $0x40] sm:$0xff]  }
  0x48   : > { %831 = vmatprep.subr.bf16.mxu1 %v1818_v33 }
  0x4b   : > { %832 = vmatpush1.bf16.msra.mxu1 %v1735_v45  ;;  %v1747_v45 = vld [vmem:[%s2175_s4 + $0x90] sm:$0xff]  }
  0x4c   : > { %833 = vmatprep.subr.bf16.mxu1 %v1818_v33 }
  0x4f   : > { %834 = vmatpush1.bf16.msra.mxu1 %v1736_v51  ;;  %v1750_v51 = vld [vmem:[%s2175_s4 + $0xa8] sm:$0xff]  }
  0x50   : > { %835 = vmatprep.subr.bf16.mxu1 %v1818_v33 }
  0x53   : > { %836 = vmatpush1.bf16.msra.mxu1 %v1737_v55  ;;  %v1754_v55 = vld [vmem:[%s2175_s4 + $0xc8] sm:$0xff]  }
  0x54   : > { %917 = vmatprep.subr.bf16.mxu1 %v1818_v33 }
  0xa2   : > { %v359_v9 = vpop.permute.xlu0 %358 }
  0xa3   : > { %365 = vst.msk [vmem:[#allocation2 + $0x1] sm:$0xff] %vm364_vm4, %v359_v9 }
  0xa6   : > { %v361_v10 = vpop.permute.xlu0 %360 }
  0xa7   : > { %366 = vst.msk [vmem:[#allocation2 + $0x9] sm:$0xff] %vm364_vm4, %v361_v10 }
  0xaa   : > { %v379_v11 = vld [vmem:[#allocation2 + $0x1] sm:$0xff] }
  0xab   : > { %v367_v21 = vld [vmem:[#allocation2] sm:$0xff] }
  0xae   : > { %v380_v12 = vld [vmem:[#allocation2 + $0x9] sm:$0xff] }
  0xaf   : > { %v381_v14 = vpack.c.bf16 %v380_v12, %v379_v11  ;;  %v368_v20 = vld [vmem:[#allocation2 + $0x8] sm:$0xff] }
  0xb0   : > { %v369_v23 = vpack.c.bf16 %v368_v20, %v367_v21  ;;  %v541_v29 = vld [vmem:[#allocation2 + $0x2] sm:$0xff]  ;;  %v542_v30 = vld [vmem:[#allocation2 + $0xa] sm:$0xff] }
  0xb1   : > { %1601 = vmatmul.mubr.msk.bf16.vlgmr.msra.gmra.mrb[0].mxu0 %vm349_vm0, %v381_v14  ;;  %v543_v31 = vpack.c.bf16 %v542_v30, %v541_v29  ;;  %v1739_v30 = vld [vmem:[%s2175_s4 + $0x8] sm:$0xff]  }
  0xb2   : > { %1605 = vmatpush3.bf16.msra.mxu0 %v1719_v13  ;;  %1614 = vmatprep.mubr.msk.bf16.mxu0 %vm1816_vm2, %v1815_v0 }
  0xb3   : > { %1606 = vmatprep.subr.bf16.mxu0 %v1815_v0 }
  0xb6   : > { %1607 = vmatpush3.bf16.msra.mxu0 %v1720_v15 }
  0xb7   : > { %1608 = vmatprep.subr.bf16.mxu0 %v1815_v0 }
  0xba   : > { %1609 = vmatpush3.bf16.msra.mxu0 %v1721_v16 }
  0xbb   : > { %1610 = vmatprep.subr.bf16.mxu0 %v1815_v0 }
  0xbe   : > { %1611 = vmatpush3.bf16.msra.mxu0 %v1722_v17 }
  0xbf   : > { %1612 = vmatprep.subr.bf16.mxu0 %v1815_v0 }
  0xc2   : > { %1613 = vmatpush3.bf16.msra.mxu0 %v498_v19 }
  0xc3   : > { %1618 = vmatprep.subr.bf16.mxu0 %v1815_v0 }
  0xc5   : > { %1615 = vmatmul.mubr.msk.bf16.vlgmr.msra.gmra.mrb[0].mxu0 %vm349_vm0, %v369_v23 }
  0xc6   : > { %1619 = vmatpush3.bf16.msra.mxu0 %v1724_v22  ;;  %1628 = vmatprep.mubr.msk.bf16.mxu0 %vm1816_vm2, %v1815_v0 }
  0xc7   : > { %1620 = vmatprep.subr.bf16.mxu0 %v1815_v0 }
  0xca   : > { %1621 = vmatpush3.bf16.msra.mxu0 %v1725_v24 }
  0xcb   : > { %1622 = vmatprep.subr.bf16.mxu0 %v1815_v0 }
  0xce   : > { %1623 = vmatpush3.bf16.msra.mxu0 %v1726_v25  ;;  %v1738_v25 = vld [vmem:[%s2175_s4] sm:$0xff]  }
  0xcf   : > { %1624 = vmatprep.subr.bf16.mxu0 %v1815_v0 }
  0xd2   : > { %1625 = vmatpush3.bf16.msra.mxu0 %v1727_v26 }
  0xd3   : > { %1626 = vmatprep.subr.bf16.mxu0 %v1815_v0 }
  0xd6   : > { %1627 = vmatpush3.bf16.msra.mxu0 %v585_v28 }
  0xd7   : > { %1632 = vmatprep.subr.bf16.mxu0 %v1815_v0 }
  0xd9   : > { %1629 = vmatmul.mubr.msk.bf16.vlgmr.msra.gmra.mrb[0].mxu0 %vm349_vm0, %v543_v31  ;;  %v1740_v31 = vld [vmem:[%s2175_s4 + $0x10] sm:$0xff]  }
  0xda   : > { %1648 = vmatprep.mubr.msk.bf16.mxu0 %vm1816_vm2, %v1815_v0  ;;  %1633 = vmatpush3.bf16.msra.mxu0 %v1756_v57 }
  0xdb   : > { %1634 = vmatprep.subr.bf16.mxu0 %v1815_v0 }
  0xde   : > { %1635 = vmatpush3.bf16.msra.mxu0 %v1757_v58 }
  0xdf   : > { %1636 = vmatprep.subr.bf16.mxu0 %v1815_v0 }
  0xe2   : > { %1637 = vmatpush3.bf16.msra.mxu0 %v1758_v59  ;;  %v1755_v59 = vld [vmem:[%s2175_s4 + $0xd0] sm:$0xff]  }
  0xe3   : > { %1638 = vmatprep.subr.bf16.mxu0 %v1815_v0 }
  0xe6   : > { %1639 = vmatpush3.bf16.msra.mxu0 %v1759_v60 }
  0xe7   : > { %1640 = vmatprep.subr.bf16.mxu0 %v1815_v0 }
  0xea   : > { %1641 = vmatpush3.bf16.msra.mxu0 %v1760_v61 }
  0xeb   : > { %1642 = vmatprep.subr.bf16.mxu0 %v1815_v0 }
  0xee   : > { %1643 = vmatpush3.bf16.msra.mxu0 %v1761_v62 }
  0xef   : > { %1644 = vmatprep.subr.bf16.mxu0 %v1815_v0 }
 0x1ac   : > { %v621_v39 = vpop.f32.mrb[0].mxu0 }
 0x1ad   : > { %v637_v42 = vmul.f32 %v1444_v38, %v621_v39  ;;  %v1630_v43 = vpop.f32.mrb[1].mxu0 }
 0x1ae   : > { %v624_v44 = vpop.f32.mrb[2].mxu0 }
 0x1af   : > { %v638_v46 = vmul.f32 %v1444_v38, %v624_v44  ;;  %v1631_v47 = vpop.f32.mrb[3].mxu0  ;;  %v646_v48 = vadd.f32 %v1445_v40, %v637_v42 }
 0x1b1   : > { %v647_v49 = vadd.f32 %v1445_v40, %v638_v46  ;;  %v648_v50 = vmax.f32 %v646_v48, 0.0 }
 0x1b3   : > { %v649_v52 = vmax.f32 %v647_v49, 0.0  ;;  %v661_v53 = vrot.slane %v648_v50, 7  ;;  %v1748_v49 = vld [vmem:[%s2175_s4 + $0x98] sm:$0xff]   ;;  %v1749_v50 = vld [vmem:[%s2175_s4 + $0xa0] sm:$0xff]  }
 0x1b5   : > { %v662_v54 = vrot.slane %v649_v52, 7  ;;  %664 = vrot.lane.b32.xlu1 %v661_v53, %s1819_s14  ;;  %v1751_v52 = vld [vmem:[%s2175_s4 + $0xb0] sm:$0xff]  }
 0x1b7   : > { %668 = vrot.lane.b32.xlu0 %v662_v54, %s1819_s14  ;;  %v663_v56 = vsel %vm660_vm7, %v661_v53, %v662_v54  ;;  %v1752_v53 = vld [vmem:[%s2175_s4 + $0xb8] sm:$0xff]   ;;  %v1753_v54 = vld [vmem:[%s2175_s4 + $0xc0] sm:$0xff]  }
 0x1b9   : > { %666 = vrot.lane.b32.xlu1 %v663_v56, %s1819_s14 }
 0x227   : > { %v665_v63 = vpop.permute.xlu1 %664 }
 0x228   : > { %674 = vst.msk [vmem:[#allocation3] sm:$0xfe] %vm673_vm8, %v665_v63 }
 0x229   : > { %676 = vst.msk [vmem:[#allocation3 + $0x8] sm:$0xfe] %vm675_vm9, %v665_v63  ;;  %v669_v1 = vpop.permute.xlu0 %668 }
 0x22a   : > { %682 = vst.msk [vmem:[#allocation3 + $0x20] sm:$0x1] %vm681_vm10, %v669_v1 }
 0x22b   : > { %684 = vst.msk [vmem:[#allocation3 + $0x28] sm:$0x1] %vm683_vm11, %v669_v1  ;;  %v667_v2 = vpop.permute.xlu1 %666  ;;  %v1762_v1 = vld [vmem:[%s2178_s7 + $0x30] sm:$0xff]  }
 0x22c   : > { %678 = vst.msk [vmem:[#allocation3 + $0x10] sm:$0xff] %vm677_vm12, %v667_v2  ;;  %1645 = vmatpush3.bf16.msra.mxu0 %v1762_v1 }
 0x22d   : > { %680 = vst.msk [vmem:[#allocation3 + $0x18] sm:$0xff] %vm679_vm13, %v667_v2  ;;  %1646 = vmatprep.subr.bf16.mxu0 %v1815_v0  ;;  %v1763_v2 = vld [vmem:[%s2178_s7 + $0x38] sm:$0xff]  }
 0x22f   : > { %v709_v9 = vld [vmem:[#allocation3] sm:$0xfe] }
 0x230   : > { %v710_v5 = vld [vmem:[#allocation3 + $0x8] sm:$0xfe]  ;;  %v685_v44 = vld [vmem:[#allocation3] sm:$0xff]  ;;  %1647 = vmatpush3.bf16.msra.mxu0 %v1763_v2 }
 0x231   : > { %v711_v4 = vld [vmem:[#allocation3 + $0x20] sm:$0x1]  ;;  %v686_v27 = vld [vmem:[#allocation3 + $0x8] sm:$0xff]  ;;  %v958_v56 = vld [vmem:[#allocation3] sm:$0xfc]  ;;  %1652 = vmatprep.subr.bf16.mxu0 %v1815_v0 }
 0x232   : > { %v712_v3 = vld [vmem:[#allocation3 + $0x28] sm:$0x1]  ;;  %v715_v10 = vpack.c.bf16 %v711_v4, %v711_v4  ;;  %v959_v38 = vld [vmem:[#allocation3 + $0x8] sm:$0xfc]  ;;  %v960_v57 = vld [vmem:[#allocation3 + $0x20] sm:$0x3] }
 0x233   : > { %v716_v6 = vpack.c.bf16 %v712_v3, %v712_v3  ;;  %v2033_v8 = vld [vmem:[#allocation3 + $0x10] sm:$0xff]  ;;  %v961_v39 = vld [vmem:[#allocation3 + $0x28] sm:$0x3]  ;;  %v964_v60 = vpack.c.bf16 %v960_v57, %v960_v57 }
 0x234   : > { %v688_v7 = vld [vmem:[#allocation3 + $0x18] sm:$0xff]  ;;  %v713_v12 = vpack.c.bf16 %v2033_v8, %v709_v9  ;;  %v745_v16 = vshll.u32 %v715_v10, 16  ;;  %v965_v42 = vpack.c.bf16 %v961_v39, %v961_v39  ;;  %v689_v46 = vpack.c.bf16 %v2033_v8, %v685_v44  ;;  %v1513_v4 = vld [vmem:[%s2177_s6] ss:$0 sm:$0xff] }
 0x235   : > { %v714_v11 = vpack.c.bf16 %v688_v7, %v710_v5  ;;  %v757_v14 = vshll.u32 %v716_v6, 16  ;;  %v690_v29 = vpack.c.bf16 %v688_v7, %v686_v27  ;;  %v963_v40 = vpack.c.bf16 %v688_v7, %v959_v38 }
 0x236   : > { %v740_v15 = vshll.u32 %v713_v12, 16  ;;  %v738_v19 = vshrl.u32 %v713_v12, 16  ;;  %v747_v24 = vrot.slane %v745_v16, 1  ;;  %v994_v47 = vrot.slane %v965_v42, 1  ;;  %v1765_v16 = vld [vmem:[%s2178_s7 + $0x48] sm:$0xff]  }
 0x237   : > { %v752_v13 = vshll.u32 %v714_v11, 16  ;;  %v750_v17 = vshrl.u32 %v714_v11, 16  ;;  %v759_v22 = vrot.slane %v757_v14, 1  ;;  %v993_v43 = vrot.slane %v963_v40, 1  ;;  %v1764_v14 = vld [vmem:[%s2178_s7 + $0x40] sm:$0xff]  }
 0x238   : > { %v742_v20 = vrot.slane %v740_v15, 1  ;;  %v962_v58 = vpack.c.bf16 %v2033_v8, %v958_v56  ;;  %v991_v62 = vrot.slane %v964_v60, 1 }
 0x239   : > { %v754_v18 = vrot.slane %v752_v13, 1  ;;  %v995_v48 = vsel %vm989_vm15, %v993_v43, %v994_v47 }
 0x23a   : > { %v743_v23 = vor.u32 %v742_v20, %v738_v19  ;;  %v990_v61 = vrot.slane %v962_v58, 1  ;;  %v1768_v19 = vld [vmem:[%s2178_s7 + $0x60] sm:$0xff]   ;;  %v1769_v20 = vld [vmem:[%s2178_s7 + $0x68] sm:$0xff]  }
 0x23b   : > { %v755_v21 = vor.u32 %v754_v18, %v750_v17  ;;  %v1766_v17 = vld [vmem:[%s2178_s7 + $0x50] sm:$0xff]   ;;  %v1767_v18 = vld [vmem:[%s2178_s7 + $0x58] sm:$0xff]  }
 0x23c   : > { %v748_v28 = vsel %vm736_vm14, %v743_v23, %v747_v24  ;;  %v992_v63 = vsel %vm989_vm15, %v990_v61, %v991_v62  ;;  %v1514_v23 = vld [vmem:[%s2179_s8] ss:$0 sm:$0xff] }
 0x23d   : > { %v760_v26 = vsel %vm736_vm14, %v755_v21, %v759_v22  ;;  %v1770_v21 = vld [vmem:[%s2178_s7 + $0x70] sm:$0xff]   ;;  %v1771_v22 = vld [vmem:[%s2178_s7 + $0x78] sm:$0xff]  }
 0x23e   : > { %1473 = vmatprep.mubr.msk.bf16.mxu1 %vm651_vm5, %v760_v26 }
 0x23f   : > { %852 = vmatmul.mubr.bf16.vlgmr.msra.gmra.mrb[0].mxu1 %v748_v28 }
 0x240   : > { %918 = vmatpush1.bf16.msra.mxu1 %v1738_v25  ;;  %1483 = vmatprep.mubr.msk.bf16.mxu1 %vm651_vm5, %v690_v29 }
 0x241   : > { %919 = vmatprep.subr.bf16.mxu1 %v1818_v33 }
 0x244   : > { %920 = vmatpush1.bf16.msra.mxu1 %v1739_v30 }
 0x245   : > { %921 = vmatprep.subr.bf16.mxu1 %v1818_v33 }
 0x248   : > { %922 = vmatpush1.bf16.msra.mxu1 %v1740_v31 }
 0x249   : > { %923 = vmatprep.subr.bf16.mxu1 %v1818_v33 }
 0x24c   : > { %924 = vmatpush1.bf16.msra.mxu1 %v1741_v32 }
 0x24d   : > { %925 = vmatprep.subr.bf16.mxu1 %v1818_v33 }
 0x250   : > { %926 = vmatpush1.bf16.msra.mxu1 %v1742_v34 }
 0x251   : > { %927 = vmatprep.subr.bf16.mxu1 %v1818_v33 }
 0x254   : > { %928 = vmatpush1.bf16.msra.mxu1 %v1743_v35 }
 0x255   : > { %929 = vmatprep.subr.bf16.mxu1 %v1818_v33 }
 0x258   : > { %930 = vmatpush1.bf16.msra.mxu1 %v1744_v36 }
 0x259   : > { %931 = vmatprep.subr.bf16.mxu1 %v1818_v33 }
 0x25c   : > { %932 = vmatpush1.bf16.msra.mxu1 %v1745_v37 }
 0x25d   : > { %933 = vmatprep.subr.bf16.mxu1 %v1818_v33 }
 0x260   : > { %934 = vmatpush1.bf16.msra.mxu1 %v1746_v41 }
 0x261   : > { %1054 = vmatprep.subr.bf16.mxu1 %v1818_v33 }
 0x263   : > { %950 = vmatmul.mubr.bf16.vlgmr.msra.gmra.mrb[0].mxu1 %v689_v46 }
 0x264   : > { %1055 = vmatpush1.bf16.msra.mxu1 %v1747_v45  ;;  %1511 = vmatprep.mubr.msk.bf16.mxu1 %vm651_vm5, %v995_v48 }
 0x265   : > { %1056 = vmatprep.subr.bf16.mxu1 %v1818_v33 }
 0x268   : > { %1057 = vmatpush1.bf16.msra.mxu1 %v1748_v49 }
 0x269   : > { %1058 = vmatprep.subr.bf16.mxu1 %v1818_v33 }
 0x26c   : > { %1059 = vmatpush1.bf16.msra.mxu1 %v1749_v50 }
 0x26d   : > { %1060 = vmatprep.subr.bf16.mxu1 %v1818_v33 }
 0x270   : > { %1061 = vmatpush1.bf16.msra.mxu1 %v1750_v51 }
 0x271   : > { %1062 = vmatprep.subr.bf16.mxu1 %v1818_v33 }
 0x274   : > { %1063 = vmatpush1.bf16.msra.mxu1 %v1751_v52 }
 0x275   : > { %1064 = vmatprep.subr.bf16.mxu1 %v1818_v33 }
 0x278   : > { %1065 = vmatpush1.bf16.msra.mxu1 %v1752_v53 }
 0x279   : > { %1066 = vmatprep.subr.bf16.mxu1 %v1818_v33 }
 0x27c   : > { %1067 = vmatpush1.bf16.msra.mxu1 %v1753_v54 }
 0x27d   : > { %1068 = vmatprep.subr.bf16.mxu1 %v1818_v33 }
 0x280   : > { %1069 = vmatpush1.bf16.msra.mxu1 %v1754_v55 }
 0x281   : > { %1070 = vmatprep.subr.bf16.mxu1 %v1818_v33  ;;  %v1512_v33 = vld [vmem:[%s2176_s5] ss:$0 sm:$0xff] }
 0x284   : > { %1071 = vmatpush1.bf16.msra.mxu1 %v1755_v59 }
 0x287   : > { %1087 = vmatmul.mubr.bf16.vlgmr.msra.gmra.mrb[0].mxu1 %v992_v63 }
 0x35a   : > { %v1088_v3 = vpop.f32.mrb[0].mxu1 }
 0x35b   : > { %v1104_v5 = vmul.f32 %v1512_v33, %v1088_v3  ;;  %v1090_v6 = vpop.f32.mrb[1].mxu1 }
 0x35c   : > { %v1091_v7 = vpop.f32.mrb[2].mxu1 }
 0x35d   : > { %v1113_v8 = vadd.f32 %v1513_v4, %v1104_v5  ;;  %v1105_v9 = vmul.f32 %v1512_v33, %v1091_v7  ;;  %v1093_v10 = vpop.f32.mrb[3].mxu1 }
 0x35f   : > { %v1114_v11 = vadd.f32 %v1513_v4, %v1105_v9  ;;  %v1115_v12 = vmax.f32 %v1113_v8, 0.0 }
 0x361   : > { %v1116_v13 = vmax.f32 %v1114_v11, 0.0 }
 0x363   : > { %v1117_v15 = vpack.c.bf16 %v1116_v13, %v1115_v12 }
 0x365   : > { %1649 = vmatmul.mubr.bf16.vlgmr.msra.gmra.mrb[4].mxu0 %v1117_v15 }
 0x366   : > { %1653 = vmatpush3.bf16.msra.mxu0 %v1764_v14  ;;  %1668 = vmatprep.mubr.msk.bf16.mxu0 %vm1816_vm2, %v1815_v0 }
 0x367   : > { %1654 = vmatprep.subr.bf16.mxu0 %v1815_v0 }
 0x36a   : > { %1655 = vmatpush3.bf16.msra.mxu0 %v1765_v16 }
 0x36b   : > { %1656 = vmatprep.subr.bf16.mxu0 %v1815_v0 }
 0x36e   : > { %1657 = vmatpush3.bf16.msra.mxu0 %v1766_v17 }
 0x36f   : > { %1658 = vmatprep.subr.bf16.mxu0 %v1815_v0 }
 0x372   : > { %1659 = vmatpush3.bf16.msra.mxu0 %v1767_v18 }
 0x373   : > { %1660 = vmatprep.subr.bf16.mxu0 %v1815_v0 }
 0x376   : > { %1661 = vmatpush3.bf16.msra.mxu0 %v1768_v19 }
 0x377   : > { %1662 = vmatprep.subr.bf16.mxu0 %v1815_v0 }
 0x37a   : > { %1663 = vmatpush3.bf16.msra.mxu0 %v1769_v20 }
 0x37b   : > { %1664 = vmatprep.subr.bf16.mxu0 %v1815_v0 }
 0x37e   : > { %1665 = vmatpush3.bf16.msra.mxu0 %v1770_v21 }
 0x37f   : > { %1666 = vmatprep.subr.bf16.mxu0 %v1815_v0 }
 0x382   : > { %1667 = vmatpush3.bf16.msra.mxu0 %v1771_v22 }
 0x385   : > { %1669 = vmatmul.mubr.bf16.vlgmr.msra.gmra.mrb[8].mxu0 %v1117_v15 }
 0x438   : > { %v1223_v24 = vpop.f32.mrb[4].mxu0 }
 0x439   : > { %v1224_v25 = vadd.f32 %v1514_v23, %v1223_v24  ;;  %v1650_v26 = vpop.f32.mrb[5].mxu0 }
 0x43a   : > { %v1226_v27 = vpop.f32.mrb[6].mxu0 }
 0x43b   : > { %1230 = vst [vmem:[%s347_s18] sm:$0xff] %v1224_v25  ;;  %v1227_v28 = vadd.f32 %v1514_v23, %v1226_v27  ;;  %v1651_v29 = vpop.f32.mrb[7].mxu0 }
 0x43d   : > { %1231 = vst [vmem:[%s347_s18 + $0x8] sm:$0xff] %v1227_v28 }
 0x458   : > { %v1338_v0 = vpop.f32.mrb[8].mxu0 }
 0x459   : > { %v1339_v30 = vadd.f32 %v1514_v23, %v1338_v0  ;;  %v1670_v31 = vpop.f32.mrb[9].mxu0 }
 0x45a   : > { %v1341_v32 = vpop.f32.mrb[10].mxu0 }
 0x45b   : > { %1548 = vst [vmem:[%s347_s18 + $0x10] sm:$0xff] %v1339_v30  ;;  %v1342_v34 = vadd.f32 %v1514_v23, %v1341_v32  ;;  %v1671_v35 = vpop.f32.mrb[11].mxu0 }
 0x45d   : > { %1549 = vst [vmem:[%s347_s18 + $0x18] sm:$0xff] %v1342_v34 }
 0x45e PF: > { %s20_s30 = sadd.s32 1, %s1810_s30  }
 0x45f   : > { %p17_p3 = scmp.ge.s32.totalorder %s20_s30, 4  }
 0x461   :  { %19 = sbr.rel (!%p17_p3) target bundleno = 1 (0x1), region = 97 }
 0x468   :  { %1369 = vsyncpa [#allocation5], 1 }
 0x469   :  { %1371 = vsyncpa [#allocation5 + $0x1], 1 }

</bundles_post_ra>
